<compile_context>
chip_gen: v5e
topology: v5e:2x2
jax: 0.10.0
libtpu: 0.0.40
codegen_flags: <defaults>
</compile_context>

<pallas_src>
import functools
import math

import jax
import jax.numpy as jnp
from jax import lax
from jax.experimental import pallas as pl
from jax.experimental.pallas import tpu as pltpu


# ---------------------------------------------------------------------------
# Buffer setup (plain JAX glue) — mirrors PositionalEncoding.__init__
# ---------------------------------------------------------------------------
def make_pe(d_model: int, max_len: int = 5000) -> jnp.ndarray:
    position = jnp.arange(max_len, dtype=jnp.float32)[:, None]            # (max_len, 1)
    div_term = jnp.exp(
        jnp.arange(0, d_model, 2, dtype=jnp.float32) * (-math.log(10000.0) / d_model)
    )                                                                     # (d_model/2,)
    pe = jnp.zeros((max_len, 1, d_model), dtype=jnp.float32)
    pe = pe.at[:, 0, 0::2].set(jnp.sin(position * div_term))
    pe = pe.at[:, 0, 1::2].set(jnp.cos(position * div_term))
    return pe                                                             # (max_len, 1, d_model)


def _mix32(x):
    # murmur3-style uint32 finalizer — plain VPU integer ops, portable to interpret mode.
    x = x ^ (x >> jnp.uint32(16))
    x = x * jnp.uint32(0x85EBCA6B)
    x = x ^ (x >> jnp.uint32(13))
    x = x * jnp.uint32(0xC2B2AE35)
    x = x ^ (x >> jnp.uint32(16))
    return x


# ---------------------------------------------------------------------------
# Pallas kernel: one (tile_rows, B, D) slab of y = dropout(x + pe)
# ---------------------------------------------------------------------------
def pe_dropout_kernel(seed_ref, x_ref, pe_ref, o_ref, *, p: float):
    tS, B, D = x_ref.shape
    y = x_ref[...].astype(jnp.float32) + pe_ref[...]          # pe (tS,1,D) broadcasts over batch
    if p > 0.0:
        # TODO(synk): PyTorch's dropout RNG stream cannot be bit-reproduced; this uses a
        #             deterministic counter-based hash with the same keep-prob semantics.
        row0 = pl.program_id(0) * tS                           # absolute seq offset of this tile
        rows = lax.broadcasted_iota(jnp.int32, (tS, B, D), 0) + row0
        bats = lax.broadcasted_iota(jnp.int32, (tS, B, D), 1)
        lanes = lax.broadcasted_iota(jnp.int32, (tS, B, D), 2)
        idx = rows * (B * D) + bats * D + lanes                # absolute element index
        mixed = idx ^ (seed_ref[0] * jnp.int32(0x5851F42D))    # fold seed in (wrapping i32 mul)
        bits = _mix32(lax.bitcast_convert_type(mixed, jnp.uint32))
        # Integer-threshold compare on the top 24 bits: keep prob = 1 - p (one shift + one cmp).
        thresh = min(int(round(p * (1 << 24))), (1 << 24) - 1)
        r24 = (bits >> jnp.uint32(8)).astype(jnp.int32)        # in [0, 2^24)
        keep = r24 >= jnp.int32(thresh)
        y = jnp.where(keep, y * jnp.float32(1.0 / (1.0 - p)), jnp.float32(0.0))
    o_ref[...] = y.astype(o_ref.dtype)


def positional_encoding_forward(x, pe, *, p: float = 0.1, train: bool = True,
                                seed: int = 0, tile_rows: int | None = None):
    """x: (seq_len, batch, d_model); pe: (max_len, 1, d_model) float32."""
    S, B, D = x.shape
    assert 0.0 <= p < 1.0
    pe_s = pe[:S].astype(jnp.float32)                          # (S, 1, D) slice, plain-JAX glue
    p_eff = float(p) if train else 0.0
    kernel = functools.partial(pe_dropout_kernel, p=p_eff)
    seed_arr = jnp.asarray([seed], dtype=jnp.int32)

    if tile_rows is None:
        # Target ~2 MiB per x tile so double-buffered (x tile + out tile) stays well under
        # the 16 MiB (v5e) / 32 MiB (v6e, v7x) scoped-VMEM defaults while amortizing the
        # ~0.35 us per-grid-step overhead.
        bytes_per_row = B * D * x.dtype.itemsize
        tile_rows = max(1, (2 * 1024 * 1024) // max(bytes_per_row, 1))
        if tile_rows >= 8:
            tile_rows = (tile_rows // 8) * 8
    tile_rows = min(tile_rows, S)
    grid = (pl.cdiv(S, tile_rows),)

    # NOTE: for very small d_model (< 128 lanes) a lane-dense (S, B*D) layout would use
    # vregs better, but it forfeits pe's (tS,1,D) broadcast; typical transformer D >= 128
    # makes this a no-op, so the bandwidth-friendly 3D layout is kept.
    return pl.pallas_call(
        kernel,
        out_shape=jax.ShapeDtypeStruct((S, B, D), x.dtype),
        grid_spec=pltpu.PrefetchScalarGridSpec(
            num_scalar_prefetch=1,                             # seed lands in SMEM
            grid=grid,
            in_specs=[
                pl.BlockSpec((tile_rows, B, D), lambda i, seed: (i, 0, 0)),
                pl.BlockSpec((tile_rows, 1, D), lambda i, seed: (i, 0, 0)),
            ],
            out_specs=pl.BlockSpec((tile_rows, B, D), lambda i, seed: (i, 0, 0)),
        ),
        compiler_params=pltpu.CompilerParams(
            dimension_semantics=("parallel",),                 # tiles are independent
        ),
    )(seed_arr, x, pe_s)


if __name__ == "__main__":
    seq_len, batch, d_model = 8, 2, 32
    key = jax.random.PRNGKey(0)
    x = jax.random.normal(key, (seq_len, batch, d_model), dtype=jnp.float32)

    pe = make_pe(d_model, max_len=5000)
    ref = x + pe[:seq_len]

    # Eval mode (dropout = identity) — exact semantics of x + pe[:S].
    out_eval = positional_encoding_forward(x, pe, p=0.1, train=False)
    out_eval = jax.block_until_ready(out_eval)
    assert out_eval.shape == (seq_len, batch, d_model)
    assert jnp.allclose(out_eval, ref, atol=1e-6, rtol=1e-6), "mismatch vs reference (eval)"

    # Train mode (dropout p=0.1) — surviving elements must equal ref / (1 - p).
    out_train = positional_encoding_forward(x, pe, p=0.1, train=True, seed=42)
    out_train = jax.block_until_ready(out_train)
    assert out_train.shape == (seq_len, batch, d_model)
    expected_train = jnp.where(out_train != 0.0, ref / (1.0 - 0.1), 0.0)
    assert jnp.allclose(out_train, expected_train, atol=1e-5, rtol=1e-5), "bad dropout scaling"

    print("KERNEL_OK")
</pallas_src>

<mosaic_0001>
module attributes {stable_mosaic.version = 11 : i64} {
  func.func @pe_dropout_kernel(%arg0: i32, %arg1: memref<1xi32, #tpu.memory_space<smem>>, %arg2: memref<8x2x32xf32, #tpu.memory_space<vmem>>, %arg3: memref<8x1x32xf32, #tpu.memory_space<vmem>>, %arg4: memref<8x2x32xf32, #tpu.memory_space<vmem>>) attributes {dimension_semantics = [#tpu.dimension_semantics<parallel>], iteration_bounds = array<i64: 1>, scalar_prefetch = 1 : i64, scratch_operands = 0 : i64, tpu.core_type = #tpu.core_type<tc>, window_params = [{transform_indices = @transform_0, window_bounds = array<i64: 8, 2, 32>}, {transform_indices = @transform_1, window_bounds = array<i64: 8, 1, 32>}, {transform_indices = @transform_2, window_bounds = array<i64: 8, 2, 32>}]} {
    %c0 = arith.constant 0 : index
    %c0_0 = arith.constant 0 : index
    %c0_1 = arith.constant 0 : index
    %0 = vector.load %arg2[%c0, %c0_0, %c0_1] : memref<8x2x32xf32, #tpu.memory_space<vmem>>, vector<8x2x32xf32>
    %c0_2 = arith.constant 0 : index
    %c0_3 = arith.constant 0 : index
    %c0_4 = arith.constant 0 : index
    %1 = vector.load %arg3[%c0_2, %c0_3, %c0_4] : memref<8x1x32xf32, #tpu.memory_space<vmem>>, vector<8x1x32xf32>
    %2 = vector.broadcast %1 : vector<8x1x32xf32> to vector<8x2x32xf32>
    %3 = arith.addf %0, %2 : vector<8x2x32xf32>
    %c0_5 = arith.constant 0 : index
    %c0_6 = arith.constant 0 : index
    %c0_7 = arith.constant 0 : index
    %4 = vector.load %arg4[%c0_5, %c0_6, %c0_7] : memref<8x2x32xf32, #tpu.memory_space<vmem>>, vector<8x2x32xf32>
    tpu.vector_store %arg4[%c0_5, %c0_6, %c0_7], %3 {strides = array<i32>} : memref<8x2x32xf32, #tpu.memory_space<vmem>>, vector<8x2x32xf32>,
    return
  }
  func.func @transform_0(%arg0: i32, %arg1: memref<1xi32, #tpu.memory_space<smem>>) -> (i32, i32, i32) {
    %c0_i32 = arith.constant 0 : i32
    %c0_i32_0 = arith.constant 0 : i32
    %c0_i32_1 = arith.constant 0 : i32
    return %arg0, %c0_i32, %c0_i32_0 : i32, i32, i32
  }
  func.func @transform_1(%arg0: i32, %arg1: memref<1xi32, #tpu.memory_space<smem>>) -> (i32, i32, i32) {
    %c0_i32 = arith.constant 0 : i32
    %c0_i32_0 = arith.constant 0 : i32
    %c0_i32_1 = arith.constant 0 : i32
    return %arg0, %c0_i32, %c0_i32_0 : i32, i32, i32
  }
  func.func @transform_2(%arg0: i32, %arg1: memref<1xi32, #tpu.memory_space<smem>>) -> (i32, i32, i32) {
    %c0_i32 = arith.constant 0 : i32
    %c0_i32_0 = arith.constant 0 : i32
    %c0_i32_1 = arith.constant 0 : i32
    return %arg0, %c0_i32, %c0_i32_0 : i32, i32, i32
  }
}

</mosaic_0001>

<bundles_post_ra>
// kernel: tpu_custom_call.1
= control target key start
LH: loop header
LB: loop body
LE: loop exit
PB: predicated region body
PF: predicated region fallthrough
CT: control target
= control target key end

     0   :  { %9 = vsyncpa [#allocation5], 0  ;;  %s273_s0 = inlined_call_operand.<no memory space> [shape: s32[1], index: 0, kind: input, shape index: {}]   ;;  %s274_s1 = inlined_call_operand.hbm [shape: f32[8,2,32], index: 1, kind: input, shape index: {}]   ;;  %s275_s2 = inlined_call_operand.hbm [shape: f32[8,1,32], index: 2, kind: input, shape index: {}]   ;;  %s276_s3 = inlined_call_operand.hbm [shape: f32[8,2,32], index: 3, kind: output, shape index: {}]  }
   0x1   :  { %10 = vsyncpa [#allocation8], 0 }
   0x2   :  { %11 = vsyncpa [#allocation6], 0  ;;  %s16_s14 = sshll.u32 %s274_s1, 4  ;;  %s216_s15 = smov [#allocation4]   ;;  %s17_s14 = int_to_ptr.hbm [resolvable:$true] %s16_s14 }
   0x3   :  { %s18_s16 = sshll.u32 %s216_s15, 4  ;;  %s29_s18 = sshll.u32 %s275_s2, 4  ;;  %s19_s16 = int_to_ptr.vmem [resolvable:$true] %s18_s16  ;;  %s30_s18 = int_to_ptr.hbm [resolvable:$true] %s29_s18 }
   0x4   :  { %s217_s19 = smov 32   ;;  %s218_s20 = smov 2  }
   0x5   :  { %24 = dma.hbm_to_vmem [thread:$0]  %s17_s14, 256, %s19_s16, [#allocation5], %s217_s19, %s217_s19, %s218_s20  }
   0x6   :  { %s219_s21 = smov [#allocation7]   ;;  %s220_s23 = smov 16  }
   0x7   :  { %s31_s22 = sshll.u32 %s219_s21, 4  ;;  %s221_s1 = smov 1   ;;  %s32_s22 = int_to_ptr.vmem [resolvable:$true] %s31_s22 }
   0x8   :  { %37 = dma.hbm_to_vmem [thread:$0]  %s30_s18, 128, %s32_s22, [#allocation8], %s220_s23, %s220_s23, %s221_s1  }
   0x9   :  { %210 = dma.done.wait [#allocation5], 256  }
   0xa   :  { %211 = vsyncadd [#allocation5], 4294967040 }
   0xb   :  { %212 = dma.done.wait [#allocation8], 128  }
   0xc   :  { %213 = vsyncadd [#allocation8], 4294967168  ;;  %vm94_vm0 = vcmask 254976   ;;  %s222_s24 = smov [#allocation9]   ;;  %s109_s27 = sshll.u32 %s276_s3, 4  ;;  %s110_s27 = int_to_ptr.hbm [resolvable:$true] %s109_s27 }
   0xd   :  { %s252_s2 = sshll.u32 %s222_s24, 4  ;;  %v46_v0 = vld [vmem:[#allocation4] sm:$0x3]  ;;  %v130_v1 = vld [vmem:[#allocation7] ss:$0 sm:$0xff]  ;;  %s108_s2 = int_to_ptr.vmem [resolvable:$true] %s252_s2 }
   0xe   :  { %v47_v2 = vld [vmem:[#allocation4 + $0x2] sm:$0x3]  ;;  %v131_v3 = vld [vmem:[#allocation7 + $0x1] ss:$0 sm:$0xff]  ;;  %v86_v4 = vadd.f32 %v130_v1, %v46_v0  ;;  %v48_v5 = vld [vmem:[#allocation4 + $0x4] sm:$0x3] }
   0xf   :  { %v132_v6 = vld [vmem:[#allocation7 + $0x2] ss:$0 sm:$0xff]  ;;  %v87_v7 = vadd.f32 %v131_v3, %v47_v2  ;;  %v49_v8 = vld [vmem:[#allocation4 + $0x6] sm:$0x3]  ;;  %v133_v9 = vld [vmem:[#allocation7 + $0x3] ss:$0 sm:$0xff] }
  0x10   :  { %95 = vst.msk [vmem:[#allocation9] sm:$0x3] %vm94_vm0, %v86_v4  ;;  %v88_v10 = vadd.f32 %v132_v6, %v48_v5  ;;  %v50_v11 = vld [vmem:[#allocation4 + $0x8] sm:$0x3]  ;;  %v89_v12 = vadd.f32 %v133_v9, %v49_v8  ;;  %v134_v13 = vld [vmem:[#allocation7 + $0x4] ss:$0 sm:$0xff] }
  0x11   :  { %96 = vst.msk [vmem:[#allocation9 + $0x2] sm:$0x3] %vm94_vm0, %v87_v7  ;;  %v51_v14 = vld [vmem:[#allocation4 + $0xa] sm:$0x3]  ;;  %v135_v15 = vld [vmem:[#allocation7 + $0x5] ss:$0 sm:$0xff]  ;;  %v90_v16 = vadd.f32 %v134_v13, %v50_v11 }
  0x12   :  { %97 = vst.msk [vmem:[#allocation9 + $0x4] sm:$0x3] %vm94_vm0, %v88_v10  ;;  %v52_v17 = vld [vmem:[#allocation4 + $0xc] sm:$0x3]  ;;  %v91_v18 = vadd.f32 %v135_v15, %v51_v14  ;;  %v136_v19 = vld [vmem:[#allocation7 + $0x6] ss:$0 sm:$0xff] }
  0x13   :  { %98 = vst.msk [vmem:[#allocation9 + $0x6] sm:$0x3] %vm94_vm0, %v89_v12  ;;  %v53_v20 = vld [vmem:[#allocation4 + $0xe] sm:$0x3]  ;;  %v137_v21 = vld [vmem:[#allocation7 + $0x7] ss:$0 sm:$0xff]  ;;  %v92_v22 = vadd.f32 %v136_v19, %v52_v17 }
  0x14   :  { %99 = vst.msk [vmem:[#allocation9 + $0x8] sm:$0x3] %vm94_vm0, %v90_v16  ;;  %v93_v23 = vadd.f32 %v137_v21, %v53_v20 }
  0x15   :  { %100 = vst.msk [vmem:[#allocation9 + $0xa] sm:$0x3] %vm94_vm0, %v91_v18 }
  0x16   :  { %101 = vst.msk [vmem:[#allocation9 + $0xc] sm:$0x3] %vm94_vm0, %v92_v22 }
  0x17   :  { %102 = vst.msk [vmem:[#allocation9 + $0xe] sm:$0x3] %vm94_vm0, %v93_v23 }
  0x18   :  { %115 = dma.vmem_to_hbm [thread:$0]  %s108_s2, 256, %s110_s27, [#allocation6], %s217_s19, %s217_s19, %s218_s20  }
  0x19   :  { %214 = dma.done.wait [#allocation6], 256  }
  0x1a   :  { %215 = vsyncadd [#allocation6], 4294967040 }
  0x1b   :  { %120 = vsyncpa [#allocation5], 1 }
  0x1c   :  { %121 = vsyncpa [#allocation8], 1 }
  0x1d   :  { %122 = vsyncpa [#allocation6], 1 }

</bundles_post_ra>
